<compile_context>
chip_gen: v7x
topology: tpu7x:2x2x1
jax: 0.10.0
libtpu: 0.0.40
codegen_flags: <defaults>
</compile_context>

<pallas_src>
import functools

import jax
import jax.numpy as jnp
from jax.experimental import pallas as pl
from jax.experimental.pallas import tpu as pltpu


def _conv1x1_relu_kernel(x_ref, w_ref, b_ref, o_ref):
    """o[b, f, t] = relu(sum_k w[f, k] * x[b, k, t] + bias[f]) for one step.

    x_ref: (b_tile, ni, t_hw)   activations (channels x spatial lanes)
    w_ref: (t_nf, ni)           1x1-conv weight tile
    b_ref: (t_nf, 1)            bias tile (broadcasts along lanes)
    o_ref: (b_tile, t_nf, t_hw) output tile
    """
    b_tile, ni, _ = x_ref.shape
    bias = b_ref[...].astype(jnp.float32)                 # (t_nf, 1)

    if ni <= 16:
        # Tiny contraction (e.g. ni=4): skip the MXU and do the K-sum as a few
        # VPU broadcast multiply-adds.  Weight-column slices are hoisted out
        # of the per-image loop (computed once per kernel invocation) and the
        # bias is folded into the first MAC.
        w = w_ref[...].astype(jnp.float32)                # (t_nf, ni)
        w_cols = [w[:, k:k + 1] for k in range(ni)]       # hoisted, reused
        for bb in range(b_tile):                          # unrolled (<= 8)
            x = x_ref[bb].astype(jnp.float32)             # (ni, t_hw)
            acc = w_cols[0] * x[0:1, :] + bias            # bias folded in
            for k in range(1, ni):
                acc = acc + w_cols[k] * x[k:k + 1, :]
            o_ref[bb] = jnp.maximum(acc, 0.0).astype(o_ref.dtype)
    else:
        # Realistic channel counts: MXU matmul with f32 accumulation.
        w = w_ref[...]
        for bb in range(b_tile):                          # unrolled (<= 8)
            acc = jnp.dot(w, x_ref[bb], preferred_element_type=jnp.float32)
            o_ref[bb] = jnp.maximum(acc + bias, 0.0).astype(o_ref.dtype)


@functools.lru_cache(maxsize=1)
def _vmem_budget_bytes():
    """Generation-aware VMEM budget: ~75% of physical per-core VMEM.

    v5e/v6e -> ~96 MiB, v7x -> ~48 MiB; falls back to a conservative 48 MiB
    (v7x-sized) if the hardware query is unavailable.
    """
    cap = 64 << 20
    try:
        info = pltpu.get_tpu_info()
        cap = int(getattr(info, "vmem_capacity_bytes", cap) or cap)
    except Exception:
        pass
    return (cap * 3) // 4


def _pick_tiles(N, hw_pad, ni, nf, itemsize, vmem_budget,
                target_step_bytes=2 << 20, max_t_hw=32768, max_b_tile=8):
    """Choose (b_tile, t_nf, t_hw).

    Goal: each grid step should move >= ~2 MB of HBM data (to amortize the
    ~600-cycle fixed step cost) while double-buffered blocks stay inside the
    generation-aware VMEM budget.  Lane tile is always a multiple of 128
    (hw_pad is pre-padded to 128), so stores are lane-dense.
    """
    # Only tile nf for very wide layers; 512 keeps the sublane dim 8-aligned.
    t_nf = nf if nf <= 512 else 512

    w_fixed = 2 * itemsize * (t_nf * ni + t_nf)       # weight+bias (dbl-buffered, conservative)
    per_col = 2 * itemsize * (ni + t_nf)              # dbl-buffered x & out per lane column
    avail = max(vmem_budget - w_fixed, 128 * per_col)

    # 1) Lane tile: as big as useful (kernel is memory-bound), VMEM-bounded.
    cap_hw = max(128, (avail // per_col) // 128 * 128)
    t_hw = int(min(hw_pad, max_t_hw, cap_hw))

    # 2) Batch tile: when the whole spatial extent fits in one lane tile,
    #    batch several images per step until the step moves >= target bytes.
    b_tile = 1
    if t_hw >= hw_pad:
        step_bytes = itemsize * t_hw * (ni + t_nf)
        want = -(-target_step_bytes // max(step_bytes, 1))
        fit = max(1, avail // (per_col * t_hw))
        b_tile = int(max(1, min(N, max_b_tile, want, fit)))

    # 3) Guarantee >= 2 grid steps when there is enough data to split, so both
    #    v7x TensorCores get work from the "parallel" grid axes.
    n_steps = (-(-N // b_tile)) * (-(-nf // t_nf)) * (-(-hw_pad // t_hw))
    if n_steps == 1:
        total_bytes = itemsize * (ni + t_nf) * N * hw_pad
        if total_bytes >= (2 << 20):
            if N >= 2:
                b_tile = -(-N // 2)
            elif hw_pad >= 256:
                t_hw = max(128, (hw_pad // 2) // 128 * 128)

    return int(b_tile), int(t_nf), int(t_hw)


def _param_spec(block_shape, index_map, nbytes):
    """Weight/bias BlockSpec.  These blocks only change along the slow nf-tile
    axis, so single-buffer them (pl.Buffered(1)) when they are big enough for
    the saved VMEM to matter (v7x has only 64 MiB)."""
    if nbytes >= (512 << 10):
        try:
            return pl.BlockSpec(block_shape, index_map,
                                pipeline_mode=pl.Buffered(1))
        except (TypeError, AttributeError):
            pass  # fall back to default double-buffering
    return pl.BlockSpec(block_shape, index_map)


@jax.jit
def fc2_forward(x_nchw, weight, bias):
    """Forward pass of fc2 (1x1 conv, stride 1, + ReLU), NCHW in / NCHW out.

    x_nchw : (N, ni, H, W)  (PyTorch NCHW convention)
    weight : (nf, ni, 1, 1) (PyTorch Conv2d weight layout)
    bias   : (nf,)
    returns: (N, nf, H, W)
    """
    N, ni, H, W = x_nchw.shape
    nf = weight.shape[0]
    HW = H * W
    dt = x_nchw.dtype
    itemsize = jnp.dtype(dt).itemsize

    # Free (contiguous) reshapes only -- no transposes.
    x3 = x_nchw.reshape(N, ni, HW)
    w_mat = weight.reshape(nf, ni)
    b_col = bias.reshape(nf, 1)

    # Lane-dense output: pad the flattened spatial axis to a multiple of 128
    # when needed (e.g. 14x14=196), cropped after the kernel.  Avoids masked
    # vst.msk partial stores.
    if HW % 128 != 0:
        hw_pad = ((HW + 127) // 128) * 128
        x3 = jnp.pad(x3, ((0, 0), (0, 0), (0, hw_pad - HW)))
    else:
        hw_pad = HW

    budget = _vmem_budget_bytes()
    b_tile, t_nf, t_hw = _pick_tiles(N, hw_pad, ni, nf, itemsize, budget)

    grid = (pl.cdiv(N, b_tile), pl.cdiv(nf, t_nf), pl.cdiv(hw_pad, t_hw))

    # Scoped-VMEM request derived from the SAME budget as the tile picker
    # (double-buffered activations/outputs + weights), never the full
    # physical VMEM.
    need = (2 * itemsize * b_tile * t_hw * (ni + t_nf)
            + 2 * itemsize * (t_nf * ni + t_nf))
    vmem_limit = int(min(max(need * 3 // 2, 16 << 20), budget))
    vmem_limit = max(vmem_limit, need + (1 << 20))

    cost = pl.CostEstimate(
        flops=2 * N * HW * ni * nf,
        transcendentals=0,
        bytes_accessed=itemsize * (N * HW * ni + nf * ni + nf + N * HW * nf),
    )

    w_bytes = itemsize * t_nf * ni
    in_specs = [
        # Activations: (batch tile) x (all channels) x (spatial lane tile).
        pl.BlockSpec((b_tile, ni, t_hw), lambda bi, fi, ji: (bi, 0, ji)),
        # Weight / bias: change only with the nf-tile axis; resident across
        # the inner spatial sweep.
        _param_spec((t_nf, ni), lambda bi, fi, ji: (fi, 0), w_bytes),
        _param_spec((t_nf, 1), lambda bi, fi, ji: (fi, 0), w_bytes),
    ]
    out_spec = pl.BlockSpec((b_tile, t_nf, t_hw),
                            lambda bi, fi, ji: (bi, fi, ji))

    out3 = pl.pallas_call(
        _conv1x1_relu_kernel,
        out_shape=jax.ShapeDtypeStruct((N, nf, hw_pad), dt),
        grid_spec=pltpu.PrefetchScalarGridSpec(
            num_scalar_prefetch=0,
            grid=grid,
            in_specs=in_specs,
            out_specs=out_spec,
        ),
        compiler_params=pltpu.CompilerParams(
            dimension_semantics=("parallel", "parallel", "parallel"),
            vmem_limit_bytes=vmem_limit,
        ),
        cost_estimate=cost,
    )(x3, w_mat, b_col)

    if hw_pad != HW:
        out3 = out3[:, :, :HW]

    # Free reshape back to NCHW.
    return out3.reshape(N, nf, H, W)


if __name__ == "__main__":
    # Small shapes consistent with the module: batch=2, ni=4, nf=8, spatial=16.
    N, ni, nf, H, W = 2, 4, 8, 16, 16

    key = jax.random.PRNGKey(0)
    kx, kw, kb = jax.random.split(key, 3)

    x = jax.random.normal(kx, (N, ni, H, W), dtype=jnp.float32)
    # Deterministic "kaiming-uniform-like" init matching Conv2d param shapes.
    fan_in = ni * 1 * 1
    bound = 1.0 / (fan_in ** 0.5)
    weight = jax.random.uniform(kw, (nf, ni, 1, 1), minval=-bound, maxval=bound,
                                dtype=jnp.float32)
    bias = jax.random.uniform(kb, (nf,), minval=-bound, maxval=bound,
                              dtype=jnp.float32)

    out = fc2_forward(x, weight, bias)
    out = jax.block_until_ready(out)

    # In-script sanity check against a plain-JAX reference.
    ref = jnp.maximum(
        jnp.einsum("nchw,fc->nfhw", x, weight.reshape(nf, ni))
        + bias.reshape(1, nf, 1, 1),
        0.0,
    )
    assert out.shape == (N, nf, H, W)
    assert jnp.allclose(out, ref, atol=1e-5, rtol=1e-5)

    print("KERNEL_OK")
</pallas_src>

<mosaic_0001>
module attributes {stable_mosaic.version = 11 : i64} {
  func.func @_conv1x1_relu_kernel(%arg0: i32, %arg1: i32, %arg2: i32, %arg3: memref<2x4x256xf32, #tpu.memory_space<vmem>>, %arg4: memref<8x4xf32, #tpu.memory_space<vmem>>, %arg5: memref<8x1xf32, #tpu.memory_space<vmem>>, %arg6: memref<2x8x256xf32, #tpu.memory_space<vmem>>) attributes {dimension_semantics = [#tpu.dimension_semantics<parallel>, #tpu.dimension_semantics<parallel>, #tpu.dimension_semantics<parallel>], iteration_bounds = array<i64: 1, 1, 1>, scalar_prefetch = 0 : i64, scratch_operands = 0 : i64, tpu.core_type = #tpu.core_type<tc>, window_params = [{transform_indices = @transform_0, window_bounds = array<i64: 2, 4, 256>}, {transform_indices = @transform_1, window_bounds = array<i64: 8, 4>}, {transform_indices = @transform_2, window_bounds = array<i64: 8, 1>}, {transform_indices = @transform_3, window_bounds = array<i64: 2, 8, 256>}]} {
    %c0 = arith.constant 0 : index
    %c0_0 = arith.constant 0 : index
    %0 = vector.load %arg5[%c0, %c0_0] : memref<8x1xf32, #tpu.memory_space<vmem>>, vector<8x1xf32>
    %c0_1 = arith.constant 0 : index
    %c0_2 = arith.constant 0 : index
    %1 = vector.load %arg4[%c0_1, %c0_2] : memref<8x4xf32, #tpu.memory_space<vmem>>, vector<8x4xf32>
    %2 = vector.extract_strided_slice %1 {offsets = [0, 0], sizes = [8, 1], strides = [1, 1]} : vector<8x4xf32> to vector<8x1xf32>
    %3 = vector.extract_strided_slice %1 {offsets = [0, 1], sizes = [8, 1], strides = [1, 1]} : vector<8x4xf32> to vector<8x1xf32>
    %4 = vector.extract_strided_slice %1 {offsets = [0, 2], sizes = [8, 1], strides = [1, 1]} : vector<8x4xf32> to vector<8x1xf32>
    %5 = vector.extract_strided_slice %1 {offsets = [0, 3], sizes = [8, 1], strides = [1, 1]} : vector<8x4xf32> to vector<8x1xf32>
    %c0_3 = arith.constant 0 : index
    %c0_4 = arith.constant 0 : index
    %c0_5 = arith.constant 0 : index
    %6 = vector.load %arg3[%c0_3, %c0_4, %c0_5] : memref<2x4x256xf32, #tpu.memory_space<vmem>>, vector<1x4x256xf32>
    %7 = vector.shape_cast %6 : vector<1x4x256xf32> to vector<4x256xf32>
    %8 = vector.extract_strided_slice %7 {offsets = [0, 0], sizes = [1, 256], strides = [1, 1]} : vector<4x256xf32> to vector<1x256xf32>
    %9 = vector.broadcast %2 : vector<8x1xf32> to vector<8x256xf32>
    %10 = vector.broadcast %8 : vector<1x256xf32> to vector<8x256xf32>
    %11 = arith.mulf %9, %10 : vector<8x256xf32>
    %12 = vector.broadcast %0 : vector<8x1xf32> to vector<8x256xf32>
    %13 = arith.addf %11, %12 : vector<8x256xf32>
    %14 = vector.extract_strided_slice %7 {offsets = [1, 0], sizes = [1, 256], strides = [1, 1]} : vector<4x256xf32> to vector<1x256xf32>
    %15 = vector.broadcast %3 : vector<8x1xf32> to vector<8x256xf32>
    %16 = vector.broadcast %14 : vector<1x256xf32> to vector<8x256xf32>
    %17 = arith.mulf %15, %16 : vector<8x256xf32>
    %18 = arith.addf %13, %17 : vector<8x256xf32>
    %19 = vector.extract_strided_slice %7 {offsets = [2, 0], sizes = [1, 256], strides = [1, 1]} : vector<4x256xf32> to vector<1x256xf32>
    %20 = vector.broadcast %4 : vector<8x1xf32> to vector<8x256xf32>
    %21 = vector.broadcast %19 : vector<1x256xf32> to vector<8x256xf32>
    %22 = arith.mulf %20, %21 : vector<8x256xf32>
    %23 = arith.addf %18, %22 : vector<8x256xf32>
    %24 = vector.extract_strided_slice %7 {offsets = [3, 0], sizes = [1, 256], strides = [1, 1]} : vector<4x256xf32> to vector<1x256xf32>
    %25 = vector.broadcast %5 : vector<8x1xf32> to vector<8x256xf32>
    %26 = vector.broadcast %24 : vector<1x256xf32> to vector<8x256xf32>
    %27 = arith.mulf %25, %26 : vector<8x256xf32>
    %28 = arith.addf %23, %27 : vector<8x256xf32>
    %cst = arith.constant 0.000000e+00 : f32
    %29 = vector.broadcast %cst : f32 to vector<8x256xf32>
    %30 = arith.maximumf %28, %29 : vector<8x256xf32>
    %c0_6 = arith.constant 0 : index
    %c0_7 = arith.constant 0 : index
    %c0_8 = arith.constant 0 : index
    %31 = vector.load %arg6[%c0_6, %c0_7, %c0_8] : memref<2x8x256xf32, #tpu.memory_space<vmem>>, vector<1x8x256xf32>
    %32 = vector.shape_cast %31 : vector<1x8x256xf32> to vector<8x256xf32>
    %33 = vector.shape_cast %30 : vector<8x256xf32> to vector<1x8x256xf32>
    tpu.vector_store %arg6[%c0_6, %c0_7, %c0_8], %33 {strides = array<i32>} : memref<2x8x256xf32, #tpu.memory_space<vmem>>, vector<1x8x256xf32>,
    %c1 = arith.constant 1 : index
    %c0_9 = arith.constant 0 : index
    %c0_10 = arith.constant 0 : index
    %34 = vector.load %arg3[%c1, %c0_9, %c0_10] : memref<2x4x256xf32, #tpu.memory_space<vmem>>, vector<1x4x256xf32>
    %35 = vector.shape_cast %34 : vector<1x4x256xf32> to vector<4x256xf32>
    %36 = vector.extract_strided_slice %35 {offsets = [0, 0], sizes = [1, 256], strides = [1, 1]} : vector<4x256xf32> to vector<1x256xf32>
    %37 = vector.broadcast %2 : vector<8x1xf32> to vector<8x256xf32>
    %38 = vector.broadcast %36 : vector<1x256xf32> to vector<8x256xf32>
    %39 = arith.mulf %37, %38 : vector<8x256xf32>
    %40 = vector.broadcast %0 : vector<8x1xf32> to vector<8x256xf32>
    %41 = arith.addf %39, %40 : vector<8x256xf32>
    %42 = vector.extract_strided_slice %35 {offsets = [1, 0], sizes = [1, 256], strides = [1, 1]} : vector<4x256xf32> to vector<1x256xf32>
    %43 = vector.broadcast %3 : vector<8x1xf32> to vector<8x256xf32>
    %44 = vector.broadcast %42 : vector<1x256xf32> to vector<8x256xf32>
    %45 = arith.mulf %43, %44 : vector<8x256xf32>
    %46 = arith.addf %41, %45 : vector<8x256xf32>
    %47 = vector.extract_strided_slice %35 {offsets = [2, 0], sizes = [1, 256], strides = [1, 1]} : vector<4x256xf32> to vector<1x256xf32>
    %48 = vector.broadcast %4 : vector<8x1xf32> to vector<8x256xf32>
    %49 = vector.broadcast %47 : vector<1x256xf32> to vector<8x256xf32>
    %50 = arith.mulf %48, %49 : vector<8x256xf32>
    %51 = arith.addf %46, %50 : vector<8x256xf32>
    %52 = vector.extract_strided_slice %35 {offsets = [3, 0], sizes = [1, 256], strides = [1, 1]} : vector<4x256xf32> to vector<1x256xf32>
    %53 = vector.broadcast %5 : vector<8x1xf32> to vector<8x256xf32>
    %54 = vector.broadcast %52 : vector<1x256xf32> to vector<8x256xf32>
    %55 = arith.mulf %53, %54 : vector<8x256xf32>
    %56 = arith.addf %51, %55 : vector<8x256xf32>
    %cst_11 = arith.constant 0.000000e+00 : f32
    %57 = vector.broadcast %cst_11 : f32 to vector<8x256xf32>
    %58 = arith.maximumf %56, %57 : vector<8x256xf32>
    %c1_12 = arith.constant 1 : index
    %c0_13 = arith.constant 0 : index
    %c0_14 = arith.constant 0 : index
    %59 = vector.load %arg6[%c1_12, %c0_13, %c0_14] : memref<2x8x256xf32, #tpu.memory_space<vmem>>, vector<1x8x256xf32>
    %60 = vector.shape_cast %59 : vector<1x8x256xf32> to vector<8x256xf32>
    %61 = vector.shape_cast %58 : vector<8x256xf32> to vector<1x8x256xf32>
    tpu.vector_store %arg6[%c1_12, %c0_13, %c0_14], %61 {strides = array<i32>} : memref<2x8x256xf32, #tpu.memory_space<vmem>>, vector<1x8x256xf32>,
    return
  }
  func.func @transform_0(%arg0: i32, %arg1: i32, %arg2: i32) -> (i32, i32, i32) {
    %c0_i32 = arith.constant 0 : i32
    %c0_i32_0 = arith.constant 0 : i32
    return %arg0, %c0_i32, %arg2 : i32, i32, i32
  }
  func.func @transform_1(%arg0: i32, %arg1: i32, %arg2: i32) -> (i32, i32) {
    %c0_i32 = arith.constant 0 : i32
    %c0_i32_0 = arith.constant 0 : i32
    return %arg1, %c0_i32 : i32, i32
  }
  func.func @transform_2(%arg0: i32, %arg1: i32, %arg2: i32) -> (i32, i32) {
    %c0_i32 = arith.constant 0 : i32
    %c0_i32_0 = arith.constant 0 : i32
    return %arg1, %c0_i32 : i32, i32
  }
  func.func @transform_3(%arg0: i32, %arg1: i32, %arg2: i32) -> (i32, i32, i32) {
    %c0_i32 = arith.constant 0 : i32
    return %arg0, %arg1, %arg2 : i32, i32, i32
  }
}

</mosaic_0001>

<bundles_post_ra>
// kernel: fc2_forward.1
= control target key start
LH: loop header
LB: loop body
LE: loop exit
PB: predicated region body
PF: predicated region fallthrough
CT: control target
= control target key end

     0   :  { %v243_v0 = vmov 0   ;;  %v244_v1 = vmov 1   ;;  %v245_v4 = vmov 2   ;;  %v246_v5 = vmov 3   ;;  %s299_s1 = inlined_call_operand.vmem [shape: f32[8,4], index: 1, kind: input, shape index: {}]   ;;  %s300_s2 = inlined_call_operand.vmem [shape: f32[8,1], index: 2, kind: input, shape index: {}]   ;;  %s301_s0 = inlined_call_operand.vmem [shape: f32[2,4,256], index: 0, kind: input, shape index: {}]   ;;  %s302_s3 = inlined_call_operand.vmem [shape: f32[2,8,256], index: 3, kind: output, shape index: {}]  }
   0x1   :  { %239 = vset.pattern.permute.xlu0 %v243_v0  ;;  %240 = vset.pattern.permute.xlu1 %v244_v1  ;;  %v15_v2 = vld [vmem:[%s299_s1] sm:$0xff]  ;;  %v23_v6 = vlaneseq  ;;  %v232_v11 = vld [vmem:[%s301_s0 + $0x8] sm:$0xff] }
   0x2   :  { %19 = vperm.xlu0 %239, %v15_v2   ;;  %51 = vperm.xlu1 %240, %v15_v2   ;;  %v14_v3 = vld [vmem:[%s300_s2] sm:$0xff] }
   0x3   :  { %v24_v7 = vshrl.u32 %v23_v6, 7  ;;  %v16_v10 = vld [vmem:[%s301_s0] sm:$0xff] }
   0x5   :  { %v25_v8 = vsub.s32 0, %v24_v7  ;;  %v29_v9 = vsub.s32 4, %v24_v7  ;;  %v56_v12 = vsub.s32 1, %v24_v7  ;;  %v60_v13 = vsub.s32 5, %v24_v7 }
   0x6   :  { %45 = vperm.xlu0 %239, %v14_v3   ;;  %241 = vset.pattern.permute.xlu1 %v245_v4  ;;  %v82_v14 = vsub.s32 2, %v24_v7  ;;  %v86_v15 = vsub.s32 6, %v24_v7  ;;  %v279_v16 = vsub.s32 3, %v24_v7  ;;  %v112_v17 = vsub.s32 7, %v24_v7 }
   0x7   :  { %77 = vperm.xlu1 %241, %v15_v2   ;;  %v26_v18 = vrot.slane %v16_v10, %v25_v8  ;;  %v30_v19 = vrot.slane %v16_v10, %v29_v9  ;;  %v138_v20 = vrot.slane %v232_v11, %v25_v8  ;;  %v142_v21 = vrot.slane %v232_v11, %v29_v9 }
   0x8   :  { %v57_v22 = vrot.slane %v16_v10, %v56_v12  ;;  %v61_v23 = vrot.slane %v16_v10, %v60_v13  ;;  %v160_v24 = vrot.slane %v232_v11, %v56_v12  ;;  %v164_v25 = vrot.slane %v232_v11, %v60_v13 }
   0x9   :  { %v83_v26 = vrot.slane %v16_v10, %v82_v14  ;;  %v87_v27 = vrot.slane %v16_v10, %v86_v15  ;;  %v182_v28 = vrot.slane %v232_v11, %v82_v14  ;;  %v186_v29 = vrot.slane %v232_v11, %v86_v15 }
   0xa   :  { %242 = vset.pattern.permute.xlu0 %v246_v5  ;;  %v109_v30 = vrot.slane %v16_v10, %v279_v16  ;;  %v113_v31 = vrot.slane %v16_v10, %v112_v17  ;;  %v204_v32 = vrot.slane %v232_v11, %v279_v16  ;;  %v208_v33 = vrot.slane %v232_v11, %v112_v17 }
   0xb   :  { %103 = vperm.xlu0 %242, %v15_v2   ;;  %v36_v34 = vrot.slane %v26_v18, %v25_v8  ;;  %v40_v35 = vrot.slane %v30_v19, %v25_v8  ;;  %v148_v36 = vrot.slane %v138_v20, %v25_v8  ;;  %v152_v37 = vrot.slane %v142_v21, %v25_v8 }
   0xc   :  { %v67_v40 = vrot.slane %v57_v22, %v56_v12  ;;  %v71_v41 = vrot.slane %v61_v23, %v56_v12  ;;  %v170_v42 = vrot.slane %v160_v24, %v56_v12  ;;  %v174_v43 = vrot.slane %v164_v25, %v56_v12 }
   0xd   :  { %v93_v44 = vrot.slane %v83_v26, %v82_v14  ;;  %v97_v45 = vrot.slane %v87_v27, %v82_v14  ;;  %v192_v46 = vrot.slane %v182_v28, %v82_v14  ;;  %v196_v47 = vrot.slane %v186_v29, %v82_v14 }
   0xe   :  { %v119_v48 = vrot.slane %v109_v30, %v279_v16  ;;  %v123_v49 = vrot.slane %v113_v31, %v279_v16  ;;  %v214_v50 = vrot.slane %v204_v32, %v279_v16  ;;  %v218_v51 = vrot.slane %v208_v33, %v279_v16 }
  0x81   :  { %v20_v38 = vpop.permute.xlu0 %19  ;;  %v52_v39 = vpop.permute.xlu1 %51 }
  0x82   :  { %v41_v52 = vmul.f32 %v36_v34, %v20_v38  ;;  %v42_v53 = vmul.f32 %v40_v35, %v20_v38  ;;  %v153_v54 = vmul.f32 %v148_v36, %v20_v38  ;;  %v154_v55 = vmul.f32 %v152_v37, %v20_v38 }
  0x83   :  { %v72_v56 = vmul.f32 %v67_v40, %v52_v39  ;;  %v73_v57 = vmul.f32 %v71_v41, %v52_v39  ;;  %v175_v58 = vmul.f32 %v170_v42, %v52_v39  ;;  %v176_v59 = vmul.f32 %v174_v43, %v52_v39 }
  0x85   :  { %v46_v60 = vpop.permute.xlu0 %45 }
  0x86   :  { %v48_v61 = vadd.f32 %v46_v60, %v41_v52  ;;  %v49_v62 = vadd.f32 %v46_v60, %v42_v53  ;;  %v155_v63 = vadd.f32 %v153_v54, %v46_v60  ;;  %v156_v0 = vadd.f32 %v154_v55, %v46_v60  ;;  %v78_v1 = vpop.permute.xlu1 %77 }
  0x87   :  { %v98_v2 = vmul.f32 %v93_v44, %v78_v1  ;;  %v99_v3 = vmul.f32 %v97_v45, %v78_v1  ;;  %v197_v4 = vmul.f32 %v192_v46, %v78_v1  ;;  %v198_v5 = vmul.f32 %v196_v47, %v78_v1 }
  0x88   :  { %v74_v6 = vadd.f32 %v72_v56, %v48_v61  ;;  %v75_v7 = vadd.f32 %v73_v57, %v49_v62  ;;  %v177_v8 = vadd.f32 %v175_v58, %v155_v63  ;;  %v178_v9 = vadd.f32 %v176_v59, %v156_v0 }
  0x8a   :  { %v100_v10 = vadd.f32 %v98_v2, %v74_v6  ;;  %v101_v11 = vadd.f32 %v99_v3, %v75_v7  ;;  %v199_v12 = vadd.f32 %v197_v4, %v177_v8  ;;  %v200_v13 = vadd.f32 %v198_v5, %v178_v9  ;;  %v104_v14 = vpop.permute.xlu0 %103 }
  0x8b   :  { %v124_v15 = vmul.f32 %v119_v48, %v104_v14  ;;  %v125_v16 = vmul.f32 %v123_v49, %v104_v14  ;;  %v219_v17 = vmul.f32 %v214_v50, %v104_v14  ;;  %v220_v18 = vmul.f32 %v218_v51, %v104_v14 }
  0x8d   :  { %v126_v19 = vadd.f32 %v124_v15, %v100_v10  ;;  %v127_v20 = vadd.f32 %v125_v16, %v101_v11  ;;  %v221_v21 = vadd.f32 %v219_v17, %v199_v12  ;;  %v222_v22 = vadd.f32 %v220_v18, %v200_v13 }
  0x8f   :  { %v128_v23 = vmax.f32 %v126_v19, 0.0  ;;  %v129_v24 = vmax.f32 %v127_v20, 0.0  ;;  %v223_v25 = vmax.f32 %v221_v21, 0.0  ;;  %v224_v26 = vmax.f32 %v222_v22, 0.0 }
  0x91   :  { %130 = vst [vmem:[%s302_s3] sm:$0xff] %v128_v23  ;;  %131 = vst [vmem:[%s302_s3 + $0x8] sm:$0xff] %v129_v24 }
  0x92   :  { %233 = vst [vmem:[%s302_s3 + $0x10] sm:$0xff] %v223_v25  ;;  %234 = vst [vmem:[%s302_s3 + $0x18] sm:$0xff] %v224_v26 }

</bundles_post_ra>
